<compile_context>
chip_gen: v5e
topology: v5e:2x2
jax: 0.10.0
libtpu: 0.0.40
codegen_flags: <defaults>
</compile_context>

<pallas_src>
import functools

import jax
import jax.numpy as jnp
from jax import lax
from jax.experimental import pallas as pl
from jax.experimental.pallas import tpu as pltpu


def lstm_chunk_kernel(gx_ref, whh_ref, out_ref, h_sc, c_sc, *,
                      tc, hidden, seq_len, mask_tail):
    """One grid step == one chunk of `tc` LSTM timesteps.

    gx_ref  : (tc, Bp, 4H) f32   precomputed emb[x] @ W_ih^T + b_ih + b_hh, cols [i|f|g|o]
    whh_ref : (H, 4H)      bf16  combined recurrent weights (== W_hh.T), cols [i|f|g|o]
    out_ref : (Bp, H)      f32   final hidden state (written on last chunk only)
    h_sc    : (Bp, H)      f32   VMEM scratch, hidden-state carry
    c_sc    : (Bp, H)      f32   VMEM scratch, cell-state carry
    """
    chunk = pl.program_id(0)

    @pl.when(chunk == 0)
    def _init():
        h_sc[...] = jnp.zeros_like(h_sc)
        c_sc[...] = jnp.zeros_like(c_sc)

    def step(s, carry):
        del carry
        h_prev = h_sc[...]
        c_prev = c_sc[...]

        # One fused MXU matmul for all four gates; bf16 operands, f32 accumulation.
        gates = gx_ref[s] + jnp.dot(h_prev.astype(whh_ref.dtype), whh_ref[...],
                                    preferred_element_type=jnp.float32)   # (Bp, 4H)

        # PyTorch gate order [i, f, g, o]; all elementwise math in f32.
        i_g = jax.nn.sigmoid(gates[:, 0 * hidden:1 * hidden])
        f_g = jax.nn.sigmoid(gates[:, 1 * hidden:2 * hidden])
        g_g = jnp.tanh(gates[:, 2 * hidden:3 * hidden])
        o_g = jax.nn.sigmoid(gates[:, 3 * hidden:4 * hidden])

        c_new = f_g * c_prev + i_g * g_g
        h_new = o_g * jnp.tanh(c_new)

        if mask_tail:
            valid = (chunk * tc + s) < seq_len
            c_new = jnp.where(valid, c_new, c_prev)
            h_new = jnp.where(valid, h_new, h_prev)

        c_sc[...] = c_new
        h_sc[...] = h_new
        return 0

    lax.fori_loop(0, tc, step, 0, unroll=True)

    @pl.when(chunk == pl.num_programs(0) - 1)
    def _finalize():
        out_ref[...] = h_sc[...].astype(out_ref.dtype)


@jax.jit
def character_rnn_forward(token_ids, embedding_table, w_ih, w_hh, b_ih, b_hh):
    """Equivalent of CharacterRNN.forward.

    token_ids       : (T, B) int32
    embedding_table : (V, E) f32
    w_ih            : (4H, E) f32   (PyTorch weight_ih_l0)
    w_hh            : (4H, H) f32   (PyTorch weight_hh_l0)
    b_ih, b_hh      : (4H,)  f32
    returns         : (B, 1, H) f32   == hidden[0].squeeze(0).unsqueeze(1)
    """
    T, B = token_ids.shape
    V, E = embedding_table.shape
    H = w_hh.shape[1]

    # --- Fold Embedding + input projection + both biases into a (V, 4H) lookup table:
    #     gates_x[t, b] = emb[x[t, b]] @ W_ih^T + b_ih + b_hh == proj_table[x[t, b]]
    proj_table = (embedding_table.astype(jnp.float32) @ w_ih.T.astype(jnp.float32)
                  + (b_ih + b_hh).astype(jnp.float32))            # (V, 4H)
    gates_x = jnp.take(proj_table, token_ids, axis=0)             # (T, B, 4H) f32

    # --- Pad batch to the f32 sublane multiple (8).
    b_pad = max(8, ((B + 7) // 8) * 8)
    if b_pad != B:
        gates_x = jnp.pad(gates_x, ((0, 0), (0, b_pad - B), (0, 0)))

    # --- Time chunking: `tc` inner steps per grid iteration (amortizes per-step pipeline
    #     overhead); cap chunk size so the double-buffered input chunk stays small in VMEM.
    bytes_per_step = b_pad * 4 * H * 4
    tc = max(1, min(T, 32, (4 << 20) // max(1, 2 * bytes_per_step)))
    n_chunks = -(-T // tc)
    t_pad = n_chunks * tc
    mask_tail = t_pad != T
    if mask_tail:
        gates_x = jnp.pad(gates_x, ((0, t_pad - T), (0, 0), (0, 0)))

    # --- Combined recurrent weight (H, 4H) = W_hh.T, columns [i|f|g|o], bf16 for the MXU.
    whh_c = w_hh.T.astype(jnp.bfloat16)

    kernel = functools.partial(lstm_chunk_kernel, tc=tc, hidden=H,
                               seq_len=T, mask_tail=mask_tail)

    h_final = pl.pallas_call(
        kernel,
        out_shape=jax.ShapeDtypeStruct((b_pad, H), jnp.float32),
        grid_spec=pltpu.PrefetchScalarGridSpec(
            num_scalar_prefetch=0,
            grid=(n_chunks,),
            in_specs=[
                pl.BlockSpec((tc, b_pad, 4 * H), lambda c: (c, 0, 0)),  # streamed gx chunk
                pl.BlockSpec((H, 4 * H), lambda c: (0, 0)),             # resident W_hh (bf16)
            ],
            out_specs=pl.BlockSpec((b_pad, H), lambda c: (0, 0)),       # resident across chunks
            scratch_shapes=[
                pltpu.VMEM((b_pad, H), jnp.float32),   # h carry
                pltpu.VMEM((b_pad, H), jnp.float32),   # c carry
            ],
        ),
        compiler_params=pltpu.CompilerParams(
            dimension_semantics=("arbitrary",),  # recurrence: time chunks run sequentially
        ),
    )(gates_x, whh_c)

    # TODO(synk): for v7x, add a leading 'parallel' grid axis over batch halves to use both TCs.

    # hidden[0] is (1, B, H); .squeeze(0).unsqueeze(1) -> (B, 1, H)
    return h_final[:B, None, :]


def lstm_reference(token_ids, embedding_table, w_ih, w_hh, b_ih, b_hh):
    """Pure-JAX reference identical to PyTorch nn.LSTM semantics (f32 throughout)."""
    T, B = token_ids.shape
    H = w_hh.shape[1]
    embeds = jnp.take(embedding_table, token_ids, axis=0)  # (T, B, E)

    def step(carry, x_t):
        h, c = carry
        gates = x_t @ w_ih.T + b_ih + h @ w_hh.T + b_hh
        i, f, g, o = jnp.split(gates, 4, axis=-1)
        i = jax.nn.sigmoid(i)
        f = jax.nn.sigmoid(f)
        g = jnp.tanh(g)
        o = jax.nn.sigmoid(o)
        c = f * c + i * g
        h = o * jnp.tanh(c)
        return (h, c), None

    h0 = jnp.zeros((B, H), jnp.float32)
    (h, _), _ = lax.scan(step, (h0, h0), embeds)
    return h[:, None, :]


def _init_params(key, vocab_size, embedding_dim, hidden_dim):
    """Deterministic, PyTorch-like initialization (synthetic weights)."""
    k_emb, k_wih, k_whh, k_bih, k_bhh = jax.random.split(key, 5)
    embedding_table = jax.random.normal(k_emb, (vocab_size, embedding_dim), jnp.float32)
    bound = 1.0 / (hidden_dim ** 0.5)
    w_ih = jax.random.uniform(k_wih, (4 * hidden_dim, embedding_dim), jnp.float32, -bound, bound)
    w_hh = jax.random.uniform(k_whh, (4 * hidden_dim, hidden_dim), jnp.float32, -bound, bound)
    b_ih = jax.random.uniform(k_bih, (4 * hidden_dim,), jnp.float32, -bound, bound)
    b_hh = jax.random.uniform(k_bhh, (4 * hidden_dim,), jnp.float32, -bound, bound)
    return embedding_table, w_ih, w_hh, b_ih, b_hh


if __name__ == "__main__":
    # Small, forward-consistent shapes.
    CHAR_VOCAB_SIZE = 16
    EMBEDDING_DIM = 32
    HIDDEN_DIM = 32
    SEQ_LEN = 8
    BATCH = 2

    key = jax.random.PRNGKey(0)
    k_params, k_tokens = jax.random.split(key)

    params = _init_params(k_params, CHAR_VOCAB_SIZE, EMBEDDING_DIM, HIDDEN_DIM)
    token_ids = jax.random.randint(k_tokens, (SEQ_LEN, BATCH), 0, CHAR_VOCAB_SIZE, dtype=jnp.int32)

    out = character_rnn_forward(token_ids, *params)
    out = jax.block_until_ready(out)
    assert out.shape == (BATCH, 1, HIDDEN_DIM), out.shape

    # Correctness check against a pure-JAX f32 LSTM (bf16 recurrent weights -> loose tol).
    ref = jax.block_until_ready(lstm_reference(token_ids, *params))
    max_err = float(jnp.max(jnp.abs(out - ref)))
    assert max_err < 2e-2, f"max abs err {max_err}"

    print("KERNEL_OK")
</pallas_src>

<mosaic_0001>
module attributes {stable_mosaic.version = 11 : i64} {
  func.func @lstm_chunk_kernel(%arg0: i32, %arg1: memref<8x8x128xf32, #tpu.memory_space<vmem>>, %arg2: memref<32x128xbf16, #tpu.memory_space<vmem>>, %arg3: memref<8x32xf32, #tpu.memory_space<vmem>>, %arg4: memref<8x32xf32, #tpu.memory_space<vmem>>, %arg5: memref<8x32xf32, #tpu.memory_space<vmem>>) attributes {dimension_semantics = [#tpu.dimension_semantics<arbitrary>], iteration_bounds = array<i64: 1>, scalar_prefetch = 0 : i64, scratch_operands = 2 : i64, tpu.core_type = #tpu.core_type<tc>, window_params = [{transform_indices = @transform_0, window_bounds = array<i64: 8, 8, 128>}, {pipeline_mode = #tpu.pipeline_mode<synchronous>, transform_indices = @transform_1, window_bounds = array<i64: 32, 128>}, {pipeline_mode = #tpu.pipeline_mode<synchronous>, transform_indices = @transform_2, window_bounds = array<i64: 8, 32>}]} {
    %c0_i32 = arith.constant 0 : i32
    %0 = arith.cmpi eq, %arg0, %c0_i32 : i32
    %1 = arith.extui %0 : i1 to i32
    %c0_i32_0 = arith.constant 0 : i32
    %2 = arith.cmpi ne, %1, %c0_i32_0 : i32
    scf.if %2 {
      %cst_130 = arith.constant 0.000000e+00 : f32
      %294 = vector.broadcast %cst_130 : f32 to vector<8x32xf32>
      %c0_131 = arith.constant 0 : index
      %c0_132 = arith.constant 0 : index
      %295 = vector.load %arg4[%c0_131, %c0_132] : memref<8x32xf32, #tpu.memory_space<vmem>>, vector<8x32xf32>
      tpu.vector_store %arg4[%c0_131, %c0_132], %294 {strides = array<i32>} : memref<8x32xf32, #tpu.memory_space<vmem>>, vector<8x32xf32>,
      %cst_133 = arith.constant 0.000000e+00 : f32
      %296 = vector.broadcast %cst_133 : f32 to vector<8x32xf32>
      %c0_134 = arith.constant 0 : index
      %c0_135 = arith.constant 0 : index
      %297 = vector.load %arg5[%c0_134, %c0_135] : memref<8x32xf32, #tpu.memory_space<vmem>>, vector<8x32xf32>
      tpu.vector_store %arg5[%c0_134, %c0_135], %296 {strides = array<i32>} : memref<8x32xf32, #tpu.memory_space<vmem>>, vector<8x32xf32>,
    } else {
    }
    %c0_i32_1 = arith.constant 0 : i32
    %c0 = arith.constant 0 : index
    %c0_2 = arith.constant 0 : index
    %3 = vector.load %arg4[%c0, %c0_2] : memref<8x32xf32, #tpu.memory_space<vmem>>, vector<8x32xf32>
    %c0_3 = arith.constant 0 : index
    %c0_4 = arith.constant 0 : index
    %4 = vector.load %arg5[%c0_3, %c0_4] : memref<8x32xf32, #tpu.memory_space<vmem>>, vector<8x32xf32>
    %5 = arith.index_cast %c0_i32_1 : i32 to index
    %c0_5 = arith.constant 0 : index
    %c0_6 = arith.constant 0 : index
    %6 = vector.load %arg1[%5, %c0_5, %c0_6] : memref<8x8x128xf32, #tpu.memory_space<vmem>>, vector<1x8x128xf32>
    %7 = vector.shape_cast %6 : vector<1x8x128xf32> to vector<8x128xf32>
    %8 = arith.truncf %3 : vector<8x32xf32> to vector<8x32xbf16>
    %c0_7 = arith.constant 0 : index
    %c0_8 = arith.constant 0 : index
    %9 = vector.load %arg2[%c0_7, %c0_8] : memref<32x128xbf16, #tpu.memory_space<vmem>>, vector<32x128xbf16>
    %cst = arith.constant dense<0.000000e+00> : vector<8x128xf32>
    %10 = tpu.matmul %8, %9, %cst {dimension_numbers = #tpu.dot_dimension_numbers<[1], [0], [0], [1], [0, 0, 1, 1], [], []>} : vector<8x32xbf16>, vector<32x128xbf16>, vector<8x128xf32> -> vector<8x128xf32>
    %11 = arith.addf %7, %10 : vector<8x128xf32>
    %12 = vector.extract_strided_slice %11 {offsets = [0, 0], sizes = [8, 32], strides = [1, 1]} : vector<8x128xf32> to vector<8x32xf32>
    %13 = arith.negf %12 : vector<8x32xf32>
    %14 = math.exp %13 : vector<8x32xf32>
    %cst_9 = arith.constant 1.000000e+00 : f32
    %15 = vector.broadcast %cst_9 : f32 to vector<8x32xf32>
    %16 = arith.addf %15, %14 : vector<8x32xf32>
    %17 = arith.divf %15, %16 : vector<8x32xf32>
    %18 = vector.extract_strided_slice %11 {offsets = [0, 32], sizes = [8, 32], strides = [1, 1]} : vector<8x128xf32> to vector<8x32xf32>
    %19 = arith.negf %18 : vector<8x32xf32>
    %20 = math.exp %19 : vector<8x32xf32>
    %cst_10 = arith.constant 1.000000e+00 : f32
    %21 = vector.broadcast %cst_10 : f32 to vector<8x32xf32>
    %22 = arith.addf %21, %20 : vector<8x32xf32>
    %23 = arith.divf %21, %22 : vector<8x32xf32>
    %24 = vector.extract_strided_slice %11 {offsets = [0, 64], sizes = [8, 32], strides = [1, 1]} : vector<8x128xf32> to vector<8x32xf32>
    %25 = math.tanh %24 : vector<8x32xf32>
    %26 = vector.extract_strided_slice %11 {offsets = [0, 96], sizes = [8, 32], strides = [1, 1]} : vector<8x128xf32> to vector<8x32xf32>
    %27 = arith.negf %26 : vector<8x32xf32>
    %28 = math.exp %27 : vector<8x32xf32>
    %cst_11 = arith.constant 1.000000e+00 : f32
    %29 = vector.broadcast %cst_11 : f32 to vector<8x32xf32>
    %30 = arith.addf %29, %28 : vector<8x32xf32>
    %31 = arith.divf %29, %30 : vector<8x32xf32>
    %32 = arith.mulf %23, %4 : vector<8x32xf32>
    %33 = arith.mulf %17, %25 : vector<8x32xf32>
    %34 = arith.addf %32, %33 : vector<8x32xf32>
    %35 = math.tanh %34 : vector<8x32xf32>
    %36 = arith.mulf %31, %35 : vector<8x32xf32>
    %c0_12 = arith.constant 0 : index
    %c0_13 = arith.constant 0 : index
    %37 = vector.load %arg5[%c0_12, %c0_13] : memref<8x32xf32, #tpu.memory_space<vmem>>, vector<8x32xf32>
    tpu.vector_store %arg5[%c0_12, %c0_13], %34 {strides = array<i32>} : memref<8x32xf32, #tpu.memory_space<vmem>>, vector<8x32xf32>,
    %c0_14 = arith.constant 0 : index
    %c0_15 = arith.constant 0 : index
    %38 = vector.load %arg4[%c0_14, %c0_15] : memref<8x32xf32, #tpu.memory_space<vmem>>, vector<8x32xf32>
    tpu.vector_store %arg4[%c0_14, %c0_15], %36 {strides = array<i32>} : memref<8x32xf32, #tpu.memory_space<vmem>>, vector<8x32xf32>,
    %c1_i32 = arith.constant 1 : i32
    %c0_16 = arith.constant 0 : index
    %c0_17 = arith.constant 0 : index
    %39 = vector.load %arg4[%c0_16, %c0_17] : memref<8x32xf32, #tpu.memory_space<vmem>>, vector<8x32xf32>
    %c0_18 = arith.constant 0 : index
    %c0_19 = arith.constant 0 : index
    %40 = vector.load %arg5[%c0_18, %c0_19] : memref<8x32xf32, #tpu.memory_space<vmem>>, vector<8x32xf32>
    %41 = arith.index_cast %c1_i32 : i32 to index
    %c0_20 = arith.constant 0 : index
    %c0_21 = arith.constant 0 : index
    %42 = vector.load %arg1[%41, %c0_20, %c0_21] : memref<8x8x128xf32, #tpu.memory_space<vmem>>, vector<1x8x128xf32>
    %43 = vector.shape_cast %42 : vector<1x8x128xf32> to vector<8x128xf32>
    %44 = arith.truncf %39 : vector<8x32xf32> to vector<8x32xbf16>
    %c0_22 = arith.constant 0 : index
    %c0_23 = arith.constant 0 : index
    %45 = vector.load %arg2[%c0_22, %c0_23] : memref<32x128xbf16, #tpu.memory_space<vmem>>, vector<32x128xbf16>
    %cst_24 = arith.constant dense<0.000000e+00> : vector<8x128xf32>
    %46 = tpu.matmul %44, %45, %cst_24 {dimension_numbers = #tpu.dot_dimension_numbers<[1], [0], [0], [1], [0, 0, 1, 1], [], []>} : vector<8x32xbf16>, vector<32x128xbf16>, vector<8x128xf32> -> vector<8x128xf32>
    %47 = arith.addf %43, %46 : vector<8x128xf32>
    %48 = vector.extract_strided_slice %47 {offsets = [0, 0], sizes = [8, 32], strides = [1, 1]} : vector<8x128xf32> to vector<8x32xf32>
    %49 = arith.negf %48 : vector<8x32xf32>
    %50 = math.exp %49 : vector<8x32xf32>
    %cst_25 = arith.constant 1.000000e+00 : f32
    %51 = vector.broadcast %cst_25 : f32 to vector<8x32xf32>
    %52 = arith.addf %51, %50 : vector<8x32xf32>
    %53 = arith.divf %51, %52 : vector<8x32xf32>
    %54 = vector.extract_strided_slice %47 {offsets = [0, 32], sizes = [8, 32], strides = [1, 1]} : vector<8x128xf32> to vector<8x32xf32>
    %55 = arith.negf %54 : vector<8x32xf32>
    %56 = math.exp %55 : vector<8x32xf32>
    %cst_26 = arith.constant 1.000000e+00 : f32
    %57 = vector.broadcast %cst_26 : f32 to vector<8x32xf32>
    %58 = arith.addf %57, %56 : vector<8x32xf32>
    %59 = arith.divf %57, %58 : vector<8x32xf32>
    %60 = vector.extract_strided_slice %47 {offsets = [0, 64], sizes = [8, 32], strides = [1, 1]} : vector<8x128xf32> to vector<8x32xf32>
    %61 = math.tanh %60 : vector<8x32xf32>
    %62 = vector.extract_strided_slice %47 {offsets = [0, 96], sizes = [8, 32], strides = [1, 1]} : vector<8x128xf32> to vector<8x32xf32>
    %63 = arith.negf %62 : vector<8x32xf32>
    %64 = math.exp %63 : vector<8x32xf32>
    %cst_27 = arith.constant 1.000000e+00 : f32
    %65 = vector.broadcast %cst_27 : f32 to vector<8x32xf32>
    %66 = arith.addf %65, %64 : vector<8x32xf32>
    %67 = arith.divf %65, %66 : vector<8x32xf32>
    %68 = arith.mulf %59, %40 : vector<8x32xf32>
    %69 = arith.mulf %53, %61 : vector<8x32xf32>
    %70 = arith.addf %68, %69 : vector<8x32xf32>
    %71 = math.tanh %70 : vector<8x32xf32>
    %72 = arith.mulf %67, %71 : vector<8x32xf32>
    %c0_28 = arith.constant 0 : index
    %c0_29 = arith.constant 0 : index
    %73 = vector.load %arg5[%c0_28, %c0_29] : memref<8x32xf32, #tpu.memory_space<vmem>>, vector<8x32xf32>
    tpu.vector_store %arg5[%c0_28, %c0_29], %70 {strides = array<i32>} : memref<8x32xf32, #tpu.memory_space<vmem>>, vector<8x32xf32>,
    %c0_30 = arith.constant 0 : index
    %c0_31 = arith.constant 0 : index
    %74 = vector.load %arg4[%c0_30, %c0_31] : memref<8x32xf32, #tpu.memory_space<vmem>>, vector<8x32xf32>
    tpu.vector_store %arg4[%c0_30, %c0_31], %72 {strides = array<i32>} : memref<8x32xf32, #tpu.memory_space<vmem>>, vector<8x32xf32>,
    %c2_i32 = arith.constant 2 : i32
    %c0_32 = arith.constant 0 : index
    %c0_33 = arith.constant 0 : index
    %75 = vector.load %arg4[%c0_32, %c0_33] : memref<8x32xf32, #tpu.memory_space<vmem>>, vector<8x32xf32>
    %c0_34 = arith.constant 0 : index
    %c0_35 = arith.constant 0 : index
    %76 = vector.load %arg5[%c0_34, %c0_35] : memref<8x32xf32, #tpu.memory_space<vmem>>, vector<8x32xf32>
    %77 = arith.index_cast %c2_i32 : i32 to index
    %c0_36 = arith.constant 0 : index
    %c0_37 = arith.constant 0 : index
    %78 = vector.load %arg1[%77, %c0_36, %c0_37] : memref<8x8x128xf32, #tpu.memory_space<vmem>>, vector<1x8x128xf32>
    %79 = vector.shape_cast %78 : vector<1x8x128xf32> to vector<8x128xf32>
    %80 = arith.truncf %75 : vector<8x32xf32> to vector<8x32xbf16>
    %c0_38 = arith.constant 0 : index
    %c0_39 = arith.constant 0 : index
    %81 = vector.load %arg2[%c0_38, %c0_39] : memref<32x128xbf16, #tpu.memory_space<vmem>>, vector<32x128xbf16>
    %cst_40 = arith.constant dense<0.000000e+00> : vector<8x128xf32>
    %82 = tpu.matmul %80, %81, %cst_40 {dimension_numbers = #tpu.dot_dimension_numbers<[1], [0], [0], [1], [0, 0, 1, 1], [], []>} : vector<8x32xbf16>, vector<32x128xbf16>, vector<8x128xf32> -> vector<8x128xf32>
    %83 = arith.addf %79, %82 : vector<8x128xf32>
    %84 = vector.extract_strided_slice %83 {offsets = [0, 0], sizes = [8, 32], strides = [1, 1]} : vector<8x128xf32> to vector<8x32xf32>
    %85 = arith.negf %84 : vector<8x32xf32>
    %86 = math.exp %85 : vector<8x32xf32>
    %cst_41 = arith.constant 1.000000e+00 : f32
    %87 = vector.broadcast %cst_41 : f32 to vector<8x32xf32>
    %88 = arith.addf %87, %86 : vector<8x32xf32>
    %89 = arith.divf %87, %88 : vector<8x32xf32>
    %90 = vector.extract_strided_slice %83 {offsets = [0, 32], sizes = [8, 32], strides = [1, 1]} : vector<8x128xf32> to vector<8x32xf32>
    %91 = arith.negf %90 : vector<8x32xf32>
    %92 = math.exp %91 : vector<8x32xf32>
    %cst_42 = arith.constant 1.000000e+00 : f32
    %93 = vector.broadcast %cst_42 : f32 to vector<8x32xf32>
    %94 = arith.addf %93, %92 : vector<8x32xf32>
    %95 = arith.divf %93, %94 : vector<8x32xf32>
    %96 = vector.extract_strided_slice %83 {offsets = [0, 64], sizes = [8, 32], strides = [1, 1]} : vector<8x128xf32> to vector<8x32xf32>
    %97 = math.tanh %96 : vector<8x32xf32>
    %98 = vector.extract_strided_slice %83 {offsets = [0, 96], sizes = [8, 32], strides = [1, 1]} : vector<8x128xf32> to vector<8x32xf32>
    %99 = arith.negf %98 : vector<8x32xf32>
    %100 = math.exp %99 : vector<8x32xf32>
    %cst_43 = arith.constant 1.000000e+00 : f32
    %101 = vector.broadcast %cst_43 : f32 to vector<8x32xf32>
    %102 = arith.addf %101, %100 : vector<8x32xf32>
    %103 = arith.divf %101, %102 : vector<8x32xf32>
    %104 = arith.mulf %95, %76 : vector<8x32xf32>
    %105 = arith.mulf %89, %97 : vector<8x32xf32>
    %106 = arith.addf %104, %105 : vector<8x32xf32>
    %107 = math.tanh %106 : vector<8x32xf32>
    %108 = arith.mulf %103, %107 : vector<8x32xf32>
    %c0_44 = arith.constant 0 : index
    %c0_45 = arith.constant 0 : index
    %109 = vector.load %arg5[%c0_44, %c0_45] : memref<8x32xf32, #tpu.memory_space<vmem>>, vector<8x32xf32>
    tpu.vector_store %arg5[%c0_44, %c0_45], %106 {strides = array<i32>} : memref<8x32xf32, #tpu.memory_space<vmem>>, vector<8x32xf32>,
    %c0_46 = arith.constant 0 : index
    %c0_47 = arith.constant 0 : index
    %110 = vector.load %arg4[%c0_46, %c0_47] : memref<8x32xf32, #tpu.memory_space<vmem>>, vector<8x32xf32>
    tpu.vector_store %arg4[%c0_46, %c0_47], %108 {strides = array<i32>} : memref<8x32xf32, #tpu.memory_space<vmem>>, vector<8x32xf32>,
    %c3_i32 = arith.constant 3 : i32
    %c0_48 = arith.constant 0 : index
    %c0_49 = arith.constant 0 : index
    %111 = vector.load %arg4[%c0_48, %c0_49] : memref<8x32xf32, #tpu.memory_space<vmem>>, vector<8x32xf32>
    %c0_50 = arith.constant 0 : index
    %c0_51 = arith.constant 0 : index
    %112 = vector.load %arg5[%c0_50, %c0_51] : memref<8x32xf32, #tpu.memory_space<vmem>>, vector<8x32xf32>
    %113 = arith.index_cast %c3_i32 : i32 to index
    %c0_52 = arith.constant 0 : index
    %c0_53 = arith.constant 0 : index
    %114 = vector.load %arg1[%113, %c0_52, %c0_53] : memref<8x8x128xf32, #tpu.memory_space<vmem>>, vector<1x8x128xf32>
    %115 = vector.shape_cast %114 : vector<1x8x128xf32> to vector<8x128xf32>
    %116 = arith.truncf %111 : vector<8x32xf32> to vector<8x32xbf16>
    %c0_54 = arith.constant 0 : index
    %c0_55 = arith.constant 0 : index
    %117 = vector.load %arg2[%c0_54, %c0_55] : memref<32x128xbf16, #tpu.memory_space<vmem>>, vector<32x128xbf16>
    %cst_56 = arith.constant dense<0.000000e+00> : vector<8x128xf32>
    %118 = tpu.matmul %116, %117, %cst_56 {dimension_numbers = #tpu.dot_dimension_numbers<[1], [0], [0], [1], [0, 0, 1, 1], [], []>} : vector<8x32xbf16>, vector<32x128xbf16>, vector<8x128xf32> -> vector<8x128xf32>
    %119 = arith.addf %115, %118 : vector<8x128xf32>
    %120 = vector.extract_strided_slice %119 {offsets = [0, 0], sizes = [8, 32], strides = [1, 1]} : vector<8x128xf32> to vector<8x32xf32>
    %121 = arith.negf %120 : vector<8x32xf32>
    %122 = math.exp %121 : vector<8x32xf32>
    %cst_57 = arith.constant 1.000000e+00 : f32
    %123 = vector.broadcast %cst_57 : f32 to vector<8x32xf32>
    %124 = arith.addf %123, %122 : vector<8x32xf32>
    %125 = arith.divf %123, %124 : vector<8x32xf32>
    %126 = vector.extract_strided_slice %119 {offsets = [0, 32], sizes = [8, 32], strides = [1, 1]} : vector<8x128xf32> to vector<8x32xf32>
    %127 = arith.negf %126 : vector<8x32xf32>
    %128 = math.exp %127 : vector<8x32xf32>
    %cst_58 = arith.constant 1.000000e+00 : f32
    %129 = vector.broadcast %cst_58 : f32 to vector<8x32xf32>
    %130 = arith.addf %129, %128 : vector<8x32xf32>
    %131 = arith.divf %129, %130 : vector<8x32xf32>
    %132 = vector.extract_strided_slice %119 {offsets = [0, 64], sizes = [8, 32], strides = [1, 1]} : vector<8x128xf32> to vector<8x32xf32>
    %133 = math.tanh %132 : vector<8x32xf32>
    %134 = vector.extract_strided_slice %119 {offsets = [0, 96], sizes = [8, 32], strides = [1, 1]} : vector<8x128xf32> to vector<8x32xf32>
    %135 = arith.negf %134 : vector<8x32xf32>
    %136 = math.exp %135 : vector<8x32xf32>
    %cst_59 = arith.constant 1.000000e+00 : f32
    %137 = vector.broadcast %cst_59 : f32 to vector<8x32xf32>
    %138 = arith.addf %137, %136 : vector<8x32xf32>
    %139 = arith.divf %137, %138 : vector<8x32xf32>
    %140 = arith.mulf %131, %112 : vector<8x32xf32>
    %141 = arith.mulf %125, %133 : vector<8x32xf32>
    %142 = arith.addf %140, %141 : vector<8x32xf32>
    %143 = math.tanh %142 : vector<8x32xf32>
    %144 = arith.mulf %139, %143 : vector<8x32xf32>
    %c0_60 = arith.constant 0 : index
    %c0_61 = arith.constant 0 : index
    %145 = vector.load %arg5[%c0_60, %c0_61] : memref<8x32xf32, #tpu.memory_space<vmem>>, vector<8x32xf32>
    tpu.vector_store %arg5[%c0_60, %c0_61], %142 {strides = array<i32>} : memref<8x32xf32, #tpu.memory_space<vmem>>, vector<8x32xf32>,
    %c0_62 = arith.constant 0 : index
    %c0_63 = arith.constant 0 : index
    %146 = vector.load %arg4[%c0_62, %c0_63] : memref<8x32xf32, #tpu.memory_space<vmem>>, vector<8x32xf32>
    tpu.vector_store %arg4[%c0_62, %c0_63], %144 {strides = array<i32>} : memref<8x32xf32, #tpu.memory_space<vmem>>, vector<8x32xf32>,
    %c4_i32 = arith.constant 4 : i32
    %c0_64 = arith.constant 0 : index
    %c0_65 = arith.constant 0 : index
    %147 = vector.load %arg4[%c0_64, %c0_65] : memref<8x32xf32, #tpu.memory_space<vmem>>, vector<8x32xf32>
    %c0_66 = arith.constant 0 : index
    %c0_67 = arith.constant 0 : index
    %148 = vector.load %arg5[%c0_66, %c0_67] : memref<8x32xf32, #tpu.memory_space<vmem>>, vector<8x32xf32>
    %149 = arith.index_cast %c4_i32 : i32 to index
    %c0_68 = arith.constant 0 : index
    %c0_69 = arith.constant 0 : index
    %150 = vector.load %arg1[%149, %c0_68, %c0_69] : memref<8x8x128xf32, #tpu.memory_space<vmem>>, vector<1x8x128xf32>
    %151 = vector.shape_cast %150 : vector<1x8x128xf32> to vector<8x128xf32>
    %152 = arith.truncf %147 : vector<8x32xf32> to vector<8x32xbf16>
    %c0_70 = arith.constant 0 : index
    %c0_71 = arith.constant 0 : index
    %153 = vector.load %arg2[%c0_70, %c0_71] : memref<32x128xbf16, #tpu.memory_space<vmem>>, vector<32x128xbf16>
    %cst_72 = arith.constant dense<0.000000e+00> : vector<8x128xf32>
    %154 = tpu.matmul %152, %153, %cst_72 {dimension_numbers = #tpu.dot_dimension_numbers<[1], [0], [0], [1], [0, 0, 1, 1], [], []>} : vector<8x32xbf16>, vector<32x128xbf16>, vector<8x128xf32> -> vector<8x128xf32>
    %155 = arith.addf %151, %154 : vector<8x128xf32>
    %156 = vector.extract_strided_slice %155 {offsets = [0, 0], sizes = [8, 32], strides = [1, 1]} : vector<8x128xf32> to vector<8x32xf32>
    %157 = arith.negf %156 : vector<8x32xf32>
    %158 = math.exp %157 : vector<8x32xf32>
    %cst_73 = arith.constant 1.000000e+00 : f32
    %159 = vector.broadcast %cst_73 : f32 to vector<8x32xf32>
    %160 = arith.addf %159, %158 : vector<8x32xf32>
    %161 = arith.divf %159, %160 : vector<8x32xf32>
    %162 = vector.extract_strided_slice %155 {offsets = [0, 32], sizes = [8, 32], strides = [1, 1]} : vector<8x128xf32> to vector<8x32xf32>
    %163 = arith.negf %162 : vector<8x32xf32>
    %164 = math.exp %163 : vector<8x32xf32>
    %cst_74 = arith.constant 1.000000e+00 : f32
    %165 = vector.broadcast %cst_74 : f32 to vector<8x32xf32>
    %166 = arith.addf %165, %164 : vector<8x32xf32>
    %167 = arith.divf %165, %166 : vector<8x32xf32>
    %168 = vector.extract_strided_slice %155 {offsets = [0, 64], sizes = [8, 32], strides = [1, 1]} : vector<8x128xf32> to vector<8x32xf32>
    %169 = math.tanh %168 : vector<8x32xf32>
    %170 = vector.extract_strided_slice %155 {offsets = [0, 96], sizes = [8, 32], strides = [1, 1]} : vector<8x128xf32> to vector<8x32xf32>
    %171 = arith.negf %170 : vector<8x32xf32>
    %172 = math.exp %171 : vector<8x32xf32>
    %cst_75 = arith.constant 1.000000e+00 : f32
    %173 = vector.broadcast %cst_75 : f32 to vector<8x32xf32>
    %174 = arith.addf %173, %172 : vector<8x32xf32>
    %175 = arith.divf %173, %174 : vector<8x32xf32>
    %176 = arith.mulf %167, %148 : vector<8x32xf32>
    %177 = arith.mulf %161, %169 : vector<8x32xf32>
    %178 = arith.addf %176, %177 : vector<8x32xf32>
    %179 = math.tanh %178 : vector<8x32xf32>
    %180 = arith.mulf %175, %179 : vector<8x32xf32>
    %c0_76 = arith.constant 0 : index
    %c0_77 = arith.constant 0 : index
    %181 = vector.load %arg5[%c0_76, %c0_77] : memref<8x32xf32, #tpu.memory_space<vmem>>, vector<8x32xf32>
    tpu.vector_store %arg5[%c0_76, %c0_77], %178 {strides = array<i32>} : memref<8x32xf32, #tpu.memory_space<vmem>>, vector<8x32xf32>,
    %c0_78 = arith.constant 0 : index
    %c0_79 = arith.constant 0 : index
    %182 = vector.load %arg4[%c0_78, %c0_79] : memref<8x32xf32, #tpu.memory_space<vmem>>, vector<8x32xf32>
    tpu.vector_store %arg4[%c0_78, %c0_79], %180 {strides = array<i32>} : memref<8x32xf32, #tpu.memory_space<vmem>>, vector<8x32xf32>,
    %c5_i32 = arith.constant 5 : i32
    %c0_80 = arith.constant 0 : index
    %c0_81 = arith.constant 0 : index
    %183 = vector.load %arg4[%c0_80, %c0_81] : memref<8x32xf32, #tpu.memory_space<vmem>>, vector<8x32xf32>
    %c0_82 = arith.constant 0 : index
    %c0_83 = arith.constant 0 : index
    %184 = vector.load %arg5[%c0_82, %c0_83] : memref<8x32xf32, #tpu.memory_space<vmem>>, vector<8x32xf32>
    %185 = arith.index_cast %c5_i32 : i32 to index
    %c0_84 = arith.constant 0 : index
    %c0_85 = arith.constant 0 : index
    %186 = vector.load %arg1[%185, %c0_84, %c0_85] : memref<8x8x128xf32, #tpu.memory_space<vmem>>, vector<1x8x128xf32>
    %187 = vector.shape_cast %186 : vector<1x8x128xf32> to vector<8x128xf32>
    %188 = arith.truncf %183 : vector<8x32xf32> to vector<8x32xbf16>
    %c0_86 = arith.constant 0 : index
    %c0_87 = arith.constant 0 : index
    %189 = vector.load %arg2[%c0_86, %c0_87] : memref<32x128xbf16, #tpu.memory_space<vmem>>, vector<32x128xbf16>
    %cst_88 = arith.constant dense<0.000000e+00> : vector<8x128xf32>
    %190 = tpu.matmul %188, %189, %cst_88 {dimension_numbers = #tpu.dot_dimension_numbers<[1], [0], [0], [1], [0, 0, 1, 1], [], []>} : vector<8x32xbf16>, vector<32x128xbf16>, vector<8x128xf32> -> vector<8x128xf32>
    %191 = arith.addf %187, %190 : vector<8x128xf32>
    %192 = vector.extract_strided_slice %191 {offsets = [0, 0], sizes = [8, 32], strides = [1, 1]} : vector<8x128xf32> to vector<8x32xf32>
    %193 = arith.negf %192 : vector<8x32xf32>
    %194 = math.exp %193 : vector<8x32xf32>
    %cst_89 = arith.constant 1.000000e+00 : f32
    %195 = vector.broadcast %cst_89 : f32 to vector<8x32xf32>
    %196 = arith.addf %195, %194 : vector<8x32xf32>
    %197 = arith.divf %195, %196 : vector<8x32xf32>
    %198 = vector.extract_strided_slice %191 {offsets = [0, 32], sizes = [8, 32], strides = [1, 1]} : vector<8x128xf32> to vector<8x32xf32>
    %199 = arith.negf %198 : vector<8x32xf32>
    %200 = math.exp %199 : vector<8x32xf32>
    %cst_90 = arith.constant 1.000000e+00 : f32
    %201 = vector.broadcast %cst_90 : f32 to vector<8x32xf32>
    %202 = arith.addf %201, %200 : vector<8x32xf32>
    %203 = arith.divf %201, %202 : vector<8x32xf32>
    %204 = vector.extract_strided_slice %191 {offsets = [0, 64], sizes = [8, 32], strides = [1, 1]} : vector<8x128xf32> to vector<8x32xf32>
    %205 = math.tanh %204 : vector<8x32xf32>
    %206 = vector.extract_strided_slice %191 {offsets = [0, 96], sizes = [8, 32], strides = [1, 1]} : vector<8x128xf32> to vector<8x32xf32>
    %207 = arith.negf %206 : vector<8x32xf32>
    %208 = math.exp %207 : vector<8x32xf32>
    %cst_91 = arith.constant 1.000000e+00 : f32
    %209 = vector.broadcast %cst_91 : f32 to vector<8x32xf32>
    %210 = arith.addf %209, %208 : vector<8x32xf32>
    %211 = arith.divf %209, %210 : vector<8x32xf32>
    %212 = arith.mulf %203, %184 : vector<8x32xf32>
    %213 = arith.mulf %197, %205 : vector<8x32xf32>
    %214 = arith.addf %212, %213 : vector<8x32xf32>
    %215 = math.tanh %214 : vector<8x32xf32>
    %216 = arith.mulf %211, %215 : vector<8x32xf32>
    %c0_92 = arith.constant 0 : index
    %c0_93 = arith.constant 0 : index
    %217 = vector.load %arg5[%c0_92, %c0_93] : memref<8x32xf32, #tpu.memory_space<vmem>>, vector<8x32xf32>
    tpu.vector_store %arg5[%c0_92, %c0_93], %214 {strides = array<i32>} : memref<8x32xf32, #tpu.memory_space<vmem>>, vector<8x32xf32>,
    %c0_94 = arith.constant 0 : index
    %c0_95 = arith.constant 0 : index
    %218 = vector.load %arg4[%c0_94, %c0_95] : memref<8x32xf32, #tpu.memory_space<vmem>>, vector<8x32xf32>
    tpu.vector_store %arg4[%c0_94, %c0_95], %216 {strides = array<i32>} : memref<8x32xf32, #tpu.memory_space<vmem>>, vector<8x32xf32>,
    %c6_i32 = arith.constant 6 : i32
    %c0_96 = arith.constant 0 : index
    %c0_97 = arith.constant 0 : index
    %219 = vector.load %arg4[%c0_96, %c0_97] : memref<8x32xf32, #tpu.memory_space<vmem>>, vector<8x32xf32>
    %c0_98 = arith.constant 0 : index
    %c0_99 = arith.constant 0 : index
    %220 = vector.load %arg5[%c0_98, %c0_99] : memref<8x32xf32, #tpu.memory_space<vmem>>, vector<8x32xf32>
    %221 = arith.index_cast %c6_i32 : i32 to index
    %c0_100 = arith.constant 0 : index
    %c0_101 = arith.constant 0 : index
    %222 = vector.load %arg1[%221, %c0_100, %c0_101] : memref<8x8x128xf32, #tpu.memory_space<vmem>>, vector<1x8x128xf32>
    %223 = vector.shape_cast %222 : vector<1x8x128xf32> to vector<8x128xf32>
    %224 = arith.truncf %219 : vector<8x32xf32> to vector<8x32xbf16>
    %c0_102 = arith.constant 0 : index
    %c0_103 = arith.constant 0 : index
    %225 = vector.load %arg2[%c0_102, %c0_103] : memref<32x128xbf16, #tpu.memory_space<vmem>>, vector<32x128xbf16>
    %cst_104 = arith.constant dense<0.000000e+00> : vector<8x128xf32>
    %226 = tpu.matmul %224, %225, %cst_104 {dimension_numbers = #tpu.dot_dimension_numbers<[1], [0], [0], [1], [0, 0, 1, 1], [], []>} : vector<8x32xbf16>, vector<32x128xbf16>, vector<8x128xf32> -> vector<8x128xf32>
    %227 = arith.addf %223, %226 : vector<8x128xf32>
    %228 = vector.extract_strided_slice %227 {offsets = [0, 0], sizes = [8, 32], strides = [1, 1]} : vector<8x128xf32> to vector<8x32xf32>
    %229 = arith.negf %228 : vector<8x32xf32>
    %230 = math.exp %229 : vector<8x32xf32>
    %cst_105 = arith.constant 1.000000e+00 : f32
    %231 = vector.broadcast %cst_105 : f32 to vector<8x32xf32>
    %232 = arith.addf %231, %230 : vector<8x32xf32>
    %233 = arith.divf %231, %232 : vector<8x32xf32>
    %234 = vector.extract_strided_slice %227 {offsets = [0, 32], sizes = [8, 32], strides = [1, 1]} : vector<8x128xf32> to vector<8x32xf32>
    %235 = arith.negf %234 : vector<8x32xf32>
    %236 = math.exp %235 : vector<8x32xf32>
    %cst_106 = arith.constant 1.000000e+00 : f32
    %237 = vector.broadcast %cst_106 : f32 to vector<8x32xf32>
    %238 = arith.addf %237, %236 : vector<8x32xf32>
    %239 = arith.divf %237, %238 : vector<8x32xf32>
    %240 = vector.extract_strided_slice %227 {offsets = [0, 64], sizes = [8, 32], strides = [1, 1]} : vector<8x128xf32> to vector<8x32xf32>
    %241 = math.tanh %240 : vector<8x32xf32>
    %242 = vector.extract_strided_slice %227 {offsets = [0, 96], sizes = [8, 32], strides = [1, 1]} : vector<8x128xf32> to vector<8x32xf32>
    %243 = arith.negf %242 : vector<8x32xf32>
    %244 = math.exp %243 : vector<8x32xf32>
    %cst_107 = arith.constant 1.000000e+00 : f32
    %245 = vector.broadcast %cst_107 : f32 to vector<8x32xf32>
    %246 = arith.addf %245, %244 : vector<8x32xf32>
    %247 = arith.divf %245, %246 : vector<8x32xf32>
    %248 = arith.mulf %239, %220 : vector<8x32xf32>
    %249 = arith.mulf %233, %241 : vector<8x32xf32>
    %250 = arith.addf %248, %249 : vector<8x32xf32>
    %251 = math.tanh %250 : vector<8x32xf32>
    %252 = arith.mulf %247, %251 : vector<8x32xf32>
    %c0_108 = arith.constant 0 : index
    %c0_109 = arith.constant 0 : index
    %253 = vector.load %arg5[%c0_108, %c0_109] : memref<8x32xf32, #tpu.memory_space<vmem>>, vector<8x32xf32>
    tpu.vector_store %arg5[%c0_108, %c0_109], %250 {strides = array<i32>} : memref<8x32xf32, #tpu.memory_space<vmem>>, vector<8x32xf32>,
    %c0_110 = arith.constant 0 : index
    %c0_111 = arith.constant 0 : index
    %254 = vector.load %arg4[%c0_110, %c0_111] : memref<8x32xf32, #tpu.memory_space<vmem>>, vector<8x32xf32>
    tpu.vector_store %arg4[%c0_110, %c0_111], %252 {strides = array<i32>} : memref<8x32xf32, #tpu.memory_space<vmem>>, vector<8x32xf32>,
    %c7_i32 = arith.constant 7 : i32
    %c0_112 = arith.constant 0 : index
    %c0_113 = arith.constant 0 : index
    %255 = vector.load %arg4[%c0_112, %c0_113] : memref<8x32xf32, #tpu.memory_space<vmem>>, vector<8x32xf32>
    %c0_114 = arith.constant 0 : index
    %c0_115 = arith.constant 0 : index
    %256 = vector.load %arg5[%c0_114, %c0_115] : memref<8x32xf32, #tpu.memory_space<vmem>>, vector<8x32xf32>
    %257 = arith.index_cast %c7_i32 : i32 to index
    %c0_116 = arith.constant 0 : index
    %c0_117 = arith.constant 0 : index
    %258 = vector.load %arg1[%257, %c0_116, %c0_117] : memref<8x8x128xf32, #tpu.memory_space<vmem>>, vector<1x8x128xf32>
    %259 = vector.shape_cast %258 : vector<1x8x128xf32> to vector<8x128xf32>
    %260 = arith.truncf %255 : vector<8x32xf32> to vector<8x32xbf16>
    %c0_118 = arith.constant 0 : index
    %c0_119 = arith.constant 0 : index
    %261 = vector.load %arg2[%c0_118, %c0_119] : memref<32x128xbf16, #tpu.memory_space<vmem>>, vector<32x128xbf16>
    %cst_120 = arith.constant dense<0.000000e+00> : vector<8x128xf32>
    %262 = tpu.matmul %260, %261, %cst_120 {dimension_numbers = #tpu.dot_dimension_numbers<[1], [0], [0], [1], [0, 0, 1, 1], [], []>} : vector<8x32xbf16>, vector<32x128xbf16>, vector<8x128xf32> -> vector<8x128xf32>
    %263 = arith.addf %259, %262 : vector<8x128xf32>
    %264 = vector.extract_strided_slice %263 {offsets = [0, 0], sizes = [8, 32], strides = [1, 1]} : vector<8x128xf32> to vector<8x32xf32>
    %265 = arith.negf %264 : vector<8x32xf32>
    %266 = math.exp %265 : vector<8x32xf32>
    %cst_121 = arith.constant 1.000000e+00 : f32
    %267 = vector.broadcast %cst_121 : f32 to vector<8x32xf32>
    %268 = arith.addf %267, %266 : vector<8x32xf32>
    %269 = arith.divf %267, %268 : vector<8x32xf32>
    %270 = vector.extract_strided_slice %263 {offsets = [0, 32], sizes = [8, 32], strides = [1, 1]} : vector<8x128xf32> to vector<8x32xf32>
    %271 = arith.negf %270 : vector<8x32xf32>
    %272 = math.exp %271 : vector<8x32xf32>
    %cst_122 = arith.constant 1.000000e+00 : f32
    %273 = vector.broadcast %cst_122 : f32 to vector<8x32xf32>
    %274 = arith.addf %273, %272 : vector<8x32xf32>
    %275 = arith.divf %273, %274 : vector<8x32xf32>
    %276 = vector.extract_strided_slice %263 {offsets = [0, 64], sizes = [8, 32], strides = [1, 1]} : vector<8x128xf32> to vector<8x32xf32>
    %277 = math.tanh %276 : vector<8x32xf32>
    %278 = vector.extract_strided_slice %263 {offsets = [0, 96], sizes = [8, 32], strides = [1, 1]} : vector<8x128xf32> to vector<8x32xf32>
    %279 = arith.negf %278 : vector<8x32xf32>
    %280 = math.exp %279 : vector<8x32xf32>
    %cst_123 = arith.constant 1.000000e+00 : f32
    %281 = vector.broadcast %cst_123 : f32 to vector<8x32xf32>
    %282 = arith.addf %281, %280 : vector<8x32xf32>
    %283 = arith.divf %281, %282 : vector<8x32xf32>
    %284 = arith.mulf %275, %256 : vector<8x32xf32>
    %285 = arith.mulf %269, %277 : vector<8x32xf32>
    %286 = arith.addf %284, %285 : vector<8x32xf32>
    %287 = math.tanh %286 : vector<8x32xf32>
    %288 = arith.mulf %283, %287 : vector<8x32xf32>
    %c0_124 = arith.constant 0 : index
    %c0_125 = arith.constant 0 : index
    %289 = vector.load %arg5[%c0_124, %c0_125] : memref<8x32xf32, #tpu.memory_space<vmem>>, vector<8x32xf32>
    tpu.vector_store %arg5[%c0_124, %c0_125], %286 {strides = array<i32>} : memref<8x32xf32, #tpu.memory_space<vmem>>, vector<8x32xf32>,
    %c0_126 = arith.constant 0 : index
    %c0_127 = arith.constant 0 : index
    %290 = vector.load %arg4[%c0_126, %c0_127] : memref<8x32xf32, #tpu.memory_space<vmem>>, vector<8x32xf32>
    tpu.vector_store %arg4[%c0_126, %c0_127], %288 {strides = array<i32>} : memref<8x32xf32, #tpu.memory_space<vmem>>, vector<8x32xf32>,
    %c8_i32 = arith.constant 8 : i32
    %c0_i32_128 = arith.constant 0 : i32
    %291 = arith.cmpi eq, %arg0, %c0_i32_128 : i32
    %292 = arith.extui %291 : i1 to i32
    %c0_i32_129 = arith.constant 0 : i32
    %293 = arith.cmpi ne, %292, %c0_i32_129 : i32
    scf.if %293 {
      %c0_130 = arith.constant 0 : index
      %c0_131 = arith.constant 0 : index
      %294 = vector.load %arg4[%c0_130, %c0_131] : memref<8x32xf32, #tpu.memory_space<vmem>>, vector<8x32xf32>
      %c0_132 = arith.constant 0 : index
      %c0_133 = arith.constant 0 : index
      %295 = vector.load %arg3[%c0_132, %c0_133] : memref<8x32xf32, #tpu.memory_space<vmem>>, vector<8x32xf32>
      tpu.vector_store %arg3[%c0_132, %c0_133], %294 {strides = array<i32>} : memref<8x32xf32, #tpu.memory_space<vmem>>, vector<8x32xf32>,
    } else {
    }
    return
  }
  func.func @transform_0(%arg0: i32) -> (i32, i32, i32) {
    %c0_i32 = arith.constant 0 : i32
    %c0_i32_0 = arith.constant 0 : i32
    %c0_i32_1 = arith.constant 0 : i32
    return %arg0, %c0_i32, %c0_i32_0 : i32, i32, i32
  }
  func.func @transform_1(%arg0: i32) -> (i32, i32) {
    %c0_i32 = arith.constant 0 : i32
    %c0_i32_0 = arith.constant 0 : i32
    %c0_i32_1 = arith.constant 0 : i32
    return %c0_i32, %c0_i32_0 : i32, i32
  }
  func.func @transform_2(%arg0: i32) -> (i32, i32) {
    %c0_i32 = arith.constant 0 : i32
    %c0_i32_0 = arith.constant 0 : i32
    %c0_i32_1 = arith.constant 0 : i32
    return %c0_i32, %c0_i32_0 : i32, i32
  }
}

</mosaic_0001>

<bundles_post_ra>
// kernel: character_rnn_forward.1
= control target key start
LH: loop header
LB: loop body
LE: loop exit
PB: predicated region body
PF: predicated region fallthrough
CT: control target
= control target key end

     0   :  { %vm16_vm0 = vcmask 261120   ;;  %v911_v1 = vmov 0.0   ;;  %s912_s15 = smov 64   ;;  %s913_s16 = smov 32   ;;  %s1080_s1 = inlined_call_operand.vmem [shape: bf16[32,128], index: 1, kind: input, shape index: {}]   ;;  %s1081_s0 = inlined_call_operand.vmem [shape: f32[8,8,128], index: 0, kind: input, shape index: {}]   ;;  %s1082_s2 = inlined_call_operand.vmem [shape: f32[8,32], index: 2, kind: output, shape index: {}]  }
   0x1   :  { %v828_v0 = vld [vmem:[%s1080_s1 + $0x8] sm:$0xff]  ;;  %17 = vst.msk [vmem:[#allocation2] sm:$0xff] %vm16_vm0, %v911_v1  ;;  %v827_v2 = vld [vmem:[%s1080_s1] sm:$0xff]  ;;  %s914_s17 = smov 96  }
   0x2   :  { %18 = vst.msk [vmem:[#allocation3] sm:$0xff] %vm16_vm0, %v911_v1  ;;  %49 = vmatpush.bf16.msra.mxu0 %v828_v0  ;;  %v21_v5 = vld [vmem:[%s1081_s0] sm:$0xff]  ;;  %v830_v33 = vld [vmem:[%s1080_s1 + $0x8] sm:$0xff] }
   0x3   :  { %138 = vmatpush.bf16.msra.mxu1 %v830_v33  ;;  %v829_v34 = vld [vmem:[%s1080_s1] sm:$0xff]  ;;  %v750_v40 = vld [vmem:[%s1081_s0 + $0x8] sm:$0xff] }
   0x6   :  { %50 = vmatpush.bf16.msra.mxu0 %v827_v2 }
   0x7   :  { %139 = vmatpush.bf16.msra.mxu1 %v829_v34 }
   0x8   :  { %v19_v3 = vld [vmem:[#allocation2] sm:$0xff] }
   0x9   :  { %v22_v4 = vpack.c.bf16 %v19_v3, %v19_v3  ;;  %v20_v10 = vld [vmem:[#allocation3] sm:$0xff] }
   0xb   :  { %748 = vmatmul.msk.bf16.vlgmr.msra.gmra.mxu0 %vm16_vm0, %v22_v4 }
  0x88   :  { %v52_v6 = vpop.f32.mrf.mxu0 }
  0x89   :  { %v56_v7 = vadd.f32 %v52_v6, %v21_v5  ;;  %v832_v5 = vld [vmem:[%s1080_s1 + $0x8] sm:$0xff]  ;;  %v831_v6 = vld [vmem:[%s1080_s1] sm:$0xff] }
  0x8a   :  { %227 = vmatpush.bf16.msra.mxu2 %v832_v5 }
  0x8b   :  { %847 = vtanh.f32 %v56_v7  ;;  %v749_v11 = vmul.f32 -1.442695, %v56_v7 }
  0x8d   :  { %849 = vpow2.f32 %v749_v11 }
  0x8e   :  { %228 = vmatpush.bf16.msra.mxu2 %v831_v6  ;;  %v836_v6 = vld [vmem:[%s1080_s1 + $0x8] sm:$0xff] }
  0x8f   :  { %405 = vmatpush.bf16.msrb.mxu0 %v836_v6 }
  0x90   :  { %v54_v8 = vpop.f32.mrf.mxu0 }
  0x91   :  { %v848_v9 = vpop.eup %847 }
  0x92   :  { %83 = vrot.lane.b32.xlu0 %v848_v9, %s912_s15 }
  0x93   :  { %v850_v12 = vpop.eup %849 }
  0x94   :  { %v60_v13 = vadd.f32 1.0, %v850_v12 }
  0x96   :  { %851 = vrcp.f32 %v60_v13  ;;  %v72_v19 = vand.u32 2147483648, %v60_v13  ;;  %vm66_vm2 = vweird.f32 %v60_v13  ;;  %v70_v20 = vand.u32 2147483647, %v60_v13 }
  0x98   :  { %v73_v22 = vor.u32 1.1754944e-38, %v72_v19  ;;  %vm71_vm4 = vcmp.eq.f32.partialorder %v70_v20, 8.507059e+37 }
  0x9a   :  { %78 = vrot.lane.b32.xlu0 %v20_v10, %s913_s16  ;;  %v761_v10 = vld [vmem:[%s1081_s0 + $0x10] sm:$0xff] }
  0x9c   :  { %v852_v14 = vpop.eup %851 }
  0x9d   :  { %v62_v15 = vmul.f32 %v852_v14, %v60_v13  ;;  %vm67_vm1 = vweird.f32 %v852_v14 }
  0x9e   :  { %vm68_vm3 = vmor %vm66_vm2, %vm67_vm1 }
  0x9f   :  { %v63_v16 = vsub.f32 1.0, %v62_v15 }
  0xa1   :  { %v64_v17 = vmul.f32 %v852_v14, %v63_v16 }
  0xa3   :  { %v65_v18 = vadd.f32 %v852_v14, %v64_v17 }
  0xa5   :  { %v69_v21 = vsel %vm68_vm3, %v852_v14, %v65_v18 }
  0xa6   :  { %v74_v24 = vsel %vm71_vm4, %v73_v22, %v69_v21 }
 0x104   :  { %v84_v23 = vpop.permute.xlu0 %83 }
 0x105   :  { %v86_v25 = vmul.f32 %v84_v23, %v74_v24 }
 0x107   :  { %88 = vrot.lane.b32.xlu1 %v86_v25, %s913_s16 }
 0x10c   :  { %v79_v26 = vpop.permute.xlu0 %78 }
 0x10d   :  { %v81_v27 = vmul.f32 %v79_v26, %v74_v24 }
 0x179   :  { %v89_v28 = vpop.permute.xlu1 %88 }
 0x17a   :  { %v91_v29 = vadd.f32 %v89_v28, %v81_v27 }
 0x17c   :  { %853 = vtanh.f32 %v91_v29 }
 0x182   :  { %v854_v30 = vpop.eup %853 }
 0x183   :  { %94 = vrot.lane.b32.xlu1 %v854_v30, %s912_s15 }
 0x1f5   :  { %v95_v31 = vpop.permute.xlu1 %94 }
 0x1f6   :  { %v97_v32 = vmul.f32 %v95_v31, %v74_v24 }
 0x1f8   :  { %104 = vrot.lane.b32.xlu2 %v97_v32, %s913_s16 }
 0x200   :  { %99 = vrot.lane.b32.xlu2 %v91_v29, %s914_s17 }
 0x252   :  { %v105_v35 = vpop.permute.xlu2 %104 }
 0x253   :  { %107 = vst.msk [vmem:[#allocation2] sm:$0xff] %vm16_vm0, %v105_v35 }
 0x25a   :  { %v100_v36 = vpop.permute.xlu2 %99  ;;  %v108_v37 = vld [vmem:[#allocation2] sm:$0xff] }
 0x25b   :  { %102 = vst.msk [vmem:[#allocation3] sm:$0xff] %vm16_vm0, %v100_v36  ;;  %v112_v38 = vpack.c.bf16 %v108_v37, %v108_v37 }
 0x25d   :  { %759 = vmatmul.msk.bf16.vlgmr.msra.gmra.mxu1 %vm16_vm0, %v112_v38 }
 0x262   :  { %v109_v39 = vld [vmem:[#allocation3] sm:$0xff] }
 0x263   :  { %167 = vrot.lane.b32.xlu1 %v109_v39, %s913_s16  ;;  %v834_v39 = vld [vmem:[%s1080_s1 + $0x8] sm:$0xff] }
 0x264   :  { %316 = vmatpush.bf16.msra.mxu3 %v834_v39 }
 0x2d5   :  { %v168_v60 = vpop.permute.xlu1 %167 }
 0x2da   :  { %v141_v41 = vpop.f32.mrf.mxu1 }
 0x2db   :  { %v145_v42 = vadd.f32 %v750_v40, %v141_v41  ;;  %v833_v40 = vld [vmem:[%s1080_s1] sm:$0xff] }
 0x2dc   :  { %317 = vmatpush.bf16.msra.mxu3 %v833_v40  ;;  %v838_v40 = vld [vmem:[%s1080_s1 + $0x8] sm:$0xff] }
 0x2dd   :  { %855 = vtanh.f32 %v145_v42  ;;  %v760_v45 = vmul.f32 -1.442695, %v145_v42  ;;  %494 = vmatpush.bf16.msrb.mxu1 %v838_v40 }
 0x2df   :  { %857 = vpow2.f32 %v760_v45 }
 0x2e2   :  { %v143_v43 = vpop.f32.mrf.mxu1 }
 0x2e3   :  { %v856_v44 = vpop.eup %855 }
 0x2e4   :  { %172 = vrot.lane.b32.xlu0 %v856_v44, %s912_s15  ;;  %v772_v44 = vld [vmem:[%s1081_s0 + $0x18] sm:$0xff] }
 0x2e5   :  { %v858_v46 = vpop.eup %857 }
 0x2e6   :  { %v149_v47 = vadd.f32 1.0, %v858_v46 }
 0x2e8   :  { %859 = vrcp.f32 %v149_v47  ;;  %v161_v53 = vand.u32 2147483648, %v149_v47  ;;  %vm155_vm6 = vweird.f32 %v149_v47  ;;  %v159_v54 = vand.u32 2147483647, %v149_v47 }
 0x2ea   :  { %v162_v56 = vor.u32 1.1754944e-38, %v161_v53  ;;  %vm160_vm8 = vcmp.eq.f32.partialorder %v159_v54, 8.507059e+37 }
 0x2ee   :  { %v860_v48 = vpop.eup %859 }
 0x2ef   :  { %v151_v49 = vmul.f32 %v860_v48, %v149_v47  ;;  %vm156_vm5 = vweird.f32 %v860_v48 }
 0x2f0   :  { %vm157_vm7 = vmor %vm155_vm6, %vm156_vm5 }
 0x2f1   :  { %v152_v50 = vsub.f32 1.0, %v151_v49 }
 0x2f3   :  { %v153_v51 = vmul.f32 %v860_v48, %v152_v50 }
 0x2f5   :  { %v154_v52 = vadd.f32 %v860_v48, %v153_v51 }
 0x2f7   :  { %v158_v55 = vsel %vm157_vm7, %v860_v48, %v154_v52 }
 0x2f8   :  { %v163_v58 = vsel %vm160_vm8, %v162_v56, %v158_v55 }
 0x2f9   :  { %v170_v61 = vmul.f32 %v168_v60, %v163_v58 }
 0x356   :  { %v173_v57 = vpop.permute.xlu0 %172 }
 0x357   :  { %v175_v59 = vmul.f32 %v173_v57, %v163_v58 }
 0x359   :  { %177 = vrot.lane.b32.xlu2 %v175_v59, %s913_s16 }
 0x3b3   :  { %v178_v62 = vpop.permute.xlu2 %177 }
 0x3b4   :  { %v180_v63 = vadd.f32 %v178_v62, %v170_v61 }
 0x3b6   :  { %861 = vtanh.f32 %v180_v63  ;;  %188 = vrot.lane.b32.xlu2 %v180_v63, %s914_s17 }
 0x3bc   :  { %v862_v0 = vpop.eup %861 }
 0x3bd   :  { %183 = vrot.lane.b32.xlu0 %v862_v0, %s912_s15 }
 0x410   :  { %v189_v1 = vpop.permute.xlu2 %188 }
 0x411   :  { %191 = vst.msk [vmem:[#allocation3] sm:$0xff] %vm16_vm0, %v189_v1 }
 0x418   :  { %v198_v4 = vld [vmem:[#allocation3] sm:$0xff] }
 0x42f   :  { %v184_v2 = vpop.permute.xlu0 %183 }
 0x430   :  { %v186_v3 = vmul.f32 %v184_v2, %v163_v58 }
 0x432   :  { %193 = vrot.lane.b32.xlu1 %v186_v3, %s913_s16 }
 0x43a   :  { %256 = vrot.lane.b32.xlu1 %v198_v4, %s913_s16 }
 0x4a4   :  { %v194_v7 = vpop.permute.xlu1 %193 }
 0x4a5   :  { %196 = vst.msk [vmem:[#allocation2] sm:$0xff] %vm16_vm0, %v194_v7 }
 0x4ac   :  { %v197_v8 = vld [vmem:[#allocation2] sm:$0xff]  ;;  %v257_v30 = vpop.permute.xlu1 %256 }
 0x4ad   :  { %v201_v9 = vpack.c.bf16 %v197_v8, %v197_v8 }
 0x4af   :  { %770 = vmatmul.msk.bf16.vlgmr.msra.gmra.mxu2 %vm16_vm0, %v201_v9 }
 0x532   :  { %v230_v11 = vpop.f32.mrf.mxu2 }
 0x533   :  { %v234_v12 = vadd.f32 %v761_v10, %v230_v11  ;;  %v835_v10 = vld [vmem:[%s1080_s1] sm:$0xff] }
 0x534   :  { %406 = vmatpush.bf16.msrb.mxu0 %v835_v10  ;;  %v840_v10 = vld [vmem:[%s1080_s1 + $0x8] sm:$0xff] }
 0x535   :  { %863 = vtanh.f32 %v234_v12  ;;  %v771_v15 = vmul.f32 -1.442695, %v234_v12  ;;  %583 = vmatpush.bf16.msrb.mxu2 %v840_v10 }
 0x537   :  { %865 = vpow2.f32 %v771_v15 }
 0x53a   :  { %v232_v13 = vpop.f32.mrf.mxu2 }
 0x53b   :  { %v864_v14 = vpop.eup %863 }
 0x53c   :  { %261 = vrot.lane.b32.xlu0 %v864_v14, %s912_s15  ;;  %v783_v14 = vld [vmem:[%s1081_s0 + $0x20] sm:$0xff] }
 0x53d   :  { %v866_v16 = vpop.eup %865 }
 0x53e   :  { %v238_v17 = vadd.f32 1.0, %v866_v16 }
 0x540   :  { %867 = vrcp.f32 %v238_v17  ;;  %v250_v23 = vand.u32 2147483648, %v238_v17  ;;  %vm244_vm10 = vweird.f32 %v238_v17  ;;  %v248_v24 = vand.u32 2147483647, %v238_v17 }
 0x542   :  { %v251_v26 = vor.u32 1.1754944e-38, %v250_v23  ;;  %vm249_vm12 = vcmp.eq.f32.partialorder %v248_v24, 8.507059e+37 }
 0x546   :  { %v868_v18 = vpop.eup %867 }
 0x547   :  { %v240_v19 = vmul.f32 %v868_v18, %v238_v17  ;;  %vm245_vm9 = vweird.f32 %v868_v18 }
 0x548   :  { %vm246_vm11 = vmor %vm244_vm10, %vm245_vm9 }
 0x549   :  { %v241_v20 = vsub.f32 1.0, %v240_v19 }
 0x54b   :  { %v242_v21 = vmul.f32 %v868_v18, %v241_v20 }
 0x54d   :  { %v243_v22 = vadd.f32 %v868_v18, %v242_v21 }
 0x54f   :  { %v247_v25 = vsel %vm246_vm11, %v868_v18, %v243_v22 }
 0x550   :  { %v252_v28 = vsel %vm249_vm12, %v251_v26, %v247_v25 }
 0x551   :  { %v259_v31 = vmul.f32 %v257_v30, %v252_v28 }
 0x5ae   :  { %v262_v27 = vpop.permute.xlu0 %261 }
 0x5af   :  { %v264_v29 = vmul.f32 %v262_v27, %v252_v28 }
 0x5b1   :  { %266 = vrot.lane.b32.xlu2 %v264_v29, %s913_s16 }
 0x60b   :  { %v267_v32 = vpop.permute.xlu2 %266 }
 0x60c   :  { %v269_v33 = vadd.f32 %v267_v32, %v259_v31 }
 0x60e   :  { %869 = vtanh.f32 %v269_v33  ;;  %277 = vrot.lane.b32.xlu2 %v269_v33, %s914_s17 }
 0x614   :  { %v870_v34 = vpop.eup %869 }
 0x615   :  { %272 = vrot.lane.b32.xlu0 %v870_v34, %s912_s15 }
 0x668   :  { %v278_v35 = vpop.permute.xlu2 %277 }
 0x669   :  { %280 = vst.msk [vmem:[#allocation3] sm:$0xff] %vm16_vm0, %v278_v35 }
 0x670   :  { %v287_v38 = vld [vmem:[#allocation3] sm:$0xff] }
 0x687   :  { %v273_v36 = vpop.permute.xlu0 %272 }
 0x688   :  { %v275_v37 = vmul.f32 %v273_v36, %v252_v28 }
 0x68a   :  { %282 = vrot.lane.b32.xlu1 %v275_v37, %s913_s16 }
 0x692   :  { %345 = vrot.lane.b32.xlu1 %v287_v38, %s913_s16 }
 0x6fc   :  { %v283_v41 = vpop.permute.xlu1 %282 }
 0x6fd   :  { %285 = vst.msk [vmem:[#allocation2] sm:$0xff] %vm16_vm0, %v283_v41 }
 0x704   :  { %v286_v42 = vld [vmem:[#allocation2] sm:$0xff]  ;;  %v346_v0 = vpop.permute.xlu1 %345 }
 0x705   :  { %v290_v43 = vpack.c.bf16 %v286_v42, %v286_v42 }
 0x707   :  { %781 = vmatmul.msk.bf16.vlgmr.msra.gmra.mxu3 %vm16_vm0, %v290_v43 }
 0x78a   :  { %v319_v45 = vpop.f32.mrf.mxu3 }
 0x78b   :  { %v323_v46 = vadd.f32 %v772_v44, %v319_v45  ;;  %v837_v44 = vld [vmem:[%s1080_s1] sm:$0xff] }
 0x78c   :  { %495 = vmatpush.bf16.msrb.mxu1 %v837_v44  ;;  %v842_v44 = vld [vmem:[%s1080_s1 + $0x8] sm:$0xff] }
 0x78d   :  { %871 = vtanh.f32 %v323_v46  ;;  %v782_v49 = vmul.f32 -1.442695, %v323_v46  ;;  %672 = vmatpush.bf16.msrb.mxu3 %v842_v44 }
 0x78f   :  { %873 = vpow2.f32 %v782_v49 }
 0x792   :  { %v321_v47 = vpop.f32.mrf.mxu3 }
 0x793   :  { %v872_v48 = vpop.eup %871 }
 0x794   :  { %350 = vrot.lane.b32.xlu0 %v872_v48, %s912_s15  ;;  %v794_v48 = vld [vmem:[%s1081_s0 + $0x28] sm:$0xff] }
 0x795   :  { %v874_v50 = vpop.eup %873 }
 0x796   :  { %v327_v51 = vadd.f32 1.0, %v874_v50 }
 0x798   :  { %875 = vrcp.f32 %v327_v51  ;;  %v339_v57 = vand.u32 2147483648, %v327_v51  ;;  %vm333_vm14 = vweird.f32 %v327_v51  ;;  %v337_v58 = vand.u32 2147483647, %v327_v51 }
 0x79a   :  { %v340_v60 = vor.u32 1.1754944e-38, %v339_v57  ;;  %vm338_vm1 = vcmp.eq.f32.partialorder %v337_v58, 8.507059e+37 }
 0x79e   :  { %v876_v52 = vpop.eup %875 }
 0x79f   :  { %v329_v53 = vmul.f32 %v876_v52, %v327_v51  ;;  %vm334_vm13 = vweird.f32 %v876_v52 }
 0x7a0   :  { %vm335_vm15 = vmor %vm333_vm14, %vm334_vm13 }
 0x7a1   :  { %v330_v54 = vsub.f32 1.0, %v329_v53 }
 0x7a3   :  { %v331_v55 = vmul.f32 %v876_v52, %v330_v54 }
 0x7a5   :  { %v332_v56 = vadd.f32 %v876_v52, %v331_v55 }
 0x7a7   :  { %v336_v59 = vsel %vm335_vm15, %v876_v52, %v332_v56 }
 0x7a8   :  { %v341_v62 = vsel %vm338_vm1, %v340_v60, %v336_v59 }
 0x7a9   :  { %v348_v1 = vmul.f32 %v346_v0, %v341_v62 }
 0x806   :  { %v351_v61 = vpop.permute.xlu0 %350 }
 0x807   :  { %v353_v63 = vmul.f32 %v351_v61, %v341_v62 }
 0x809   :  { %355 = vrot.lane.b32.xlu2 %v353_v63, %s913_s16 }
 0x863   :  { %v356_v2 = vpop.permute.xlu2 %355 }
 0x864   :  { %v358_v3 = vadd.f32 %v356_v2, %v348_v1 }
 0x866   :  { %877 = vtanh.f32 %v358_v3  ;;  %366 = vrot.lane.b32.xlu2 %v358_v3, %s914_s17 }
 0x86c   :  { %v878_v4 = vpop.eup %877 }
 0x86d   :  { %361 = vrot.lane.b32.xlu0 %v878_v4, %s912_s15 }
 0x8c0   :  { %v367_v5 = vpop.permute.xlu2 %366 }
 0x8c1   :  { %369 = vst.msk [vmem:[#allocation3] sm:$0xff] %vm16_vm0, %v367_v5 }
 0x8c8   :  { %v376_v9 = vld [vmem:[#allocation3] sm:$0xff] }
 0x8df   :  { %v362_v7 = vpop.permute.xlu0 %361 }
 0x8e0   :  { %v364_v8 = vmul.f32 %v362_v7, %v341_v62 }
 0x8e2   :  { %371 = vrot.lane.b32.xlu1 %v364_v8, %s913_s16 }
 0x8ea   :  { %434 = vrot.lane.b32.xlu1 %v376_v9, %s913_s16 }
 0x954   :  { %v372_v11 = vpop.permute.xlu1 %371 }
 0x955   :  { %374 = vst.msk [vmem:[#allocation2] sm:$0xff] %vm16_vm0, %v372_v11 }
 0x95c   :  { %v375_v12 = vld [vmem:[#allocation2] sm:$0xff]  ;;  %v435_v34 = vpop.permute.xlu1 %434 }
 0x95d   :  { %v379_v13 = vpack.c.bf16 %v375_v12, %v375_v12 }
 0x95f   :  { %792 = vmatmul.msk.bf16.vlgmr.msrb.gmra.mxu0 %vm16_vm0, %v379_v13 }
 0x9dc   :  { %v408_v15 = vpop.f32.mrf.mxu0 }
 0x9dd   :  { %v412_v16 = vadd.f32 %v783_v14, %v408_v15  ;;  %v839_v14 = vld [vmem:[%s1080_s1] sm:$0xff] }
 0x9de   :  { %584 = vmatpush.bf16.msrb.mxu2 %v839_v14 }
 0x9df   :  { %879 = vtanh.f32 %v412_v16  ;;  %v793_v19 = vmul.f32 -1.442695, %v412_v16 }
 0x9e1   :  { %881 = vpow2.f32 %v793_v19 }
 0x9e4   :  { %v410_v17 = vpop.f32.mrf.mxu0 }
 0x9e5   :  { %v880_v18 = vpop.eup %879 }
 0x9e6   :  { %439 = vrot.lane.b32.xlu0 %v880_v18, %s912_s15  ;;  %v805_v18 = vld [vmem:[%s1081_s0 + $0x30] sm:$0xff] }
 0x9e7   :  { %v882_v20 = vpop.eup %881 }
 0x9e8   :  { %v416_v21 = vadd.f32 1.0, %v882_v20 }
 0x9ea   :  { %883 = vrcp.f32 %v416_v21  ;;  %v428_v27 = vand.u32 2147483648, %v416_v21  ;;  %vm422_vm3 = vweird.f32 %v416_v21  ;;  %v426_v28 = vand.u32 2147483647, %v416_v21 }
 0x9ec   :  { %v429_v30 = vor.u32 1.1754944e-38, %v428_v27  ;;  %vm427_vm5 = vcmp.eq.f32.partialorder %v426_v28, 8.507059e+37 }
 0x9f0   :  { %v884_v22 = vpop.eup %883 }
 0x9f1   :  { %v418_v23 = vmul.f32 %v884_v22, %v416_v21  ;;  %vm423_vm2 = vweird.f32 %v884_v22 }
 0x9f2   :  { %vm424_vm4 = vmor %vm422_vm3, %vm423_vm2 }
 0x9f3   :  { %v419_v24 = vsub.f32 1.0, %v418_v23 }
 0x9f5   :  { %v420_v25 = vmul.f32 %v884_v22, %v419_v24 }
 0x9f7   :  { %v421_v26 = vadd.f32 %v884_v22, %v420_v25 }
 0x9f9   :  { %v425_v29 = vsel %vm424_vm4, %v884_v22, %v421_v26 }
 0x9fa   :  { %v430_v32 = vsel %vm427_vm5, %v429_v30, %v425_v29 }
 0x9fb   :  { %v437_v35 = vmul.f32 %v435_v34, %v430_v32 }
 0xa58   :  { %v440_v31 = vpop.permute.xlu0 %439 }
 0xa59   :  { %v442_v33 = vmul.f32 %v440_v31, %v430_v32 }
 0xa5b   :  { %444 = vrot.lane.b32.xlu2 %v442_v33, %s913_s16 }
 0xab5   :  { %v445_v36 = vpop.permute.xlu2 %444 }
 0xab6   :  { %v447_v37 = vadd.f32 %v445_v36, %v437_v35 }
 0xab8   :  { %885 = vtanh.f32 %v447_v37  ;;  %455 = vrot.lane.b32.xlu2 %v447_v37, %s914_s17 }
 0xabe   :  { %v886_v38 = vpop.eup %885 }
 0xabf   :  { %450 = vrot.lane.b32.xlu0 %v886_v38, %s912_s15 }
 0xb12   :  { %v456_v39 = vpop.permute.xlu2 %455 }
 0xb13   :  { %458 = vst.msk [vmem:[#allocation3] sm:$0xff] %vm16_vm0, %v456_v39 }
 0xb1a   :  { %v465_v43 = vld [vmem:[#allocation3] sm:$0xff] }
 0xb31   :  { %v451_v41 = vpop.permute.xlu0 %450 }
 0xb32   :  { %v453_v42 = vmul.f32 %v451_v41, %v430_v32 }
 0xb34   :  { %460 = vrot.lane.b32.xlu1 %v453_v42, %s913_s16 }
 0xb3c   :  { %523 = vrot.lane.b32.xlu1 %v465_v43, %s913_s16 }
 0xba6   :  { %v461_v45 = vpop.permute.xlu1 %460 }
 0xba7   :  { %463 = vst.msk [vmem:[#allocation2] sm:$0xff] %vm16_vm0, %v461_v45 }
 0xbae   :  { %v464_v46 = vld [vmem:[#allocation2] sm:$0xff]  ;;  %v524_v4 = vpop.permute.xlu1 %523 }
 0xbaf   :  { %v468_v47 = vpack.c.bf16 %v464_v46, %v464_v46 }
 0xbb1   :  { %803 = vmatmul.msk.bf16.vlgmr.msrb.gmra.mxu1 %vm16_vm0, %v468_v47 }
 0xc2e   :  { %v497_v49 = vpop.f32.mrf.mxu1 }
 0xc2f   :  { %v501_v50 = vadd.f32 %v794_v48, %v497_v49  ;;  %v841_v48 = vld [vmem:[%s1080_s1] sm:$0xff] }
 0xc30   :  { %673 = vmatpush.bf16.msrb.mxu3 %v841_v48 }
 0xc31   :  { %887 = vtanh.f32 %v501_v50  ;;  %v804_v53 = vmul.f32 -1.442695, %v501_v50 }
 0xc33   :  { %889 = vpow2.f32 %v804_v53 }
 0xc36   :  { %v499_v51 = vpop.f32.mrf.mxu1 }
 0xc37   :  { %v888_v52 = vpop.eup %887 }
 0xc38   :  { %528 = vrot.lane.b32.xlu0 %v888_v52, %s912_s15  ;;  %v816_v52 = vld [vmem:[%s1081_s0 + $0x38] sm:$0xff] }
 0xc39   :  { %v890_v54 = vpop.eup %889 }
 0xc3a   :  { %v505_v55 = vadd.f32 1.0, %v890_v54 }
 0xc3c   :  { %891 = vrcp.f32 %v505_v55  ;;  %v517_v61 = vand.u32 2147483648, %v505_v55  ;;  %vm511_vm7 = vweird.f32 %v505_v55  ;;  %v515_v62 = vand.u32 2147483647, %v505_v55 }
 0xc3e   :  { %v518_v0 = vor.u32 1.1754944e-38, %v517_v61  ;;  %vm516_vm9 = vcmp.eq.f32.partialorder %v515_v62, 8.507059e+37 }
 0xc42   :  { %v892_v56 = vpop.eup %891 }
 0xc43   :  { %v507_v57 = vmul.f32 %v892_v56, %v505_v55  ;;  %vm512_vm6 = vweird.f32 %v892_v56 }
 0xc44   :  { %vm513_vm8 = vmor %vm511_vm7, %vm512_vm6 }
 0xc45   :  { %v508_v58 = vsub.f32 1.0, %v507_v57 }
 0xc47   :  { %v509_v59 = vmul.f32 %v892_v56, %v508_v58 }
 0xc49   :  { %v510_v60 = vadd.f32 %v892_v56, %v509_v59 }
 0xc4b   :  { %v514_v63 = vsel %vm513_vm8, %v892_v56, %v510_v60 }
 0xc4c   :  { %v519_v2 = vsel %vm516_vm9, %v518_v0, %v514_v63 }
 0xc4d   :  { %v526_v5 = vmul.f32 %v524_v4, %v519_v2 }
 0xcaa   :  { %v529_v1 = vpop.permute.xlu0 %528 }
 0xcab   :  { %v531_v3 = vmul.f32 %v529_v1, %v519_v2 }
 0xcad   :  { %533 = vrot.lane.b32.xlu2 %v531_v3, %s913_s16 }
 0xd07   :  { %v534_v6 = vpop.permute.xlu2 %533 }
 0xd08   :  { %v536_v7 = vadd.f32 %v534_v6, %v526_v5 }
 0xd0a   :  { %893 = vtanh.f32 %v536_v7  ;;  %544 = vrot.lane.b32.xlu2 %v536_v7, %s914_s17 }
 0xd10   :  { %v894_v8 = vpop.eup %893 }
 0xd11   :  { %539 = vrot.lane.b32.xlu0 %v894_v8, %s912_s15 }
 0xd64   :  { %v545_v9 = vpop.permute.xlu2 %544 }
 0xd65   :  { %547 = vst.msk [vmem:[#allocation3] sm:$0xff] %vm16_vm0, %v545_v9 }
 0xd6c   :  { %v554_v13 = vld [vmem:[#allocation3] sm:$0xff] }
 0xd83   :  { %v540_v11 = vpop.permute.xlu0 %539 }
 0xd84   :  { %v542_v12 = vmul.f32 %v540_v11, %v519_v2 }
 0xd86   :  { %549 = vrot.lane.b32.xlu1 %v542_v12, %s913_s16 }
 0xd8e   :  { %612 = vrot.lane.b32.xlu1 %v554_v13, %s913_s16 }
 0xdf8   :  { %v550_v15 = vpop.permute.xlu1 %549 }
 0xdf9   :  { %552 = vst.msk [vmem:[#allocation2] sm:$0xff] %vm16_vm0, %v550_v15 }
 0xe00   :  { %v553_v16 = vld [vmem:[#allocation2] sm:$0xff]  ;;  %v613_v38 = vpop.permute.xlu1 %612 }
 0xe01   :  { %v557_v17 = vpack.c.bf16 %v553_v16, %v553_v16 }
 0xe03   :  { %814 = vmatmul.msk.bf16.vlgmr.msrb.gmra.mxu2 %vm16_vm0, %v557_v17 }
 0xe86   :  { %v586_v19 = vpop.f32.mrf.mxu2 }
 0xe87   :  { %v590_v20 = vadd.f32 %v805_v18, %v586_v19 }
 0xe89   :  { %895 = vtanh.f32 %v590_v20  ;;  %v815_v23 = vmul.f32 -1.442695, %v590_v20 }
 0xe8b   :  { %897 = vpow2.f32 %v815_v23 }
 0xe8e   :  { %v588_v21 = vpop.f32.mrf.mxu2 }
 0xe8f   :  { %v896_v22 = vpop.eup %895 }
 0xe90   :  { %617 = vrot.lane.b32.xlu0 %v896_v22, %s912_s15 }
 0xe91   :  { %v898_v24 = vpop.eup %897 }
 0xe92   :  { %v594_v25 = vadd.f32 1.0, %v898_v24 }
 0xe94   :  { %899 = vrcp.f32 %v594_v25  ;;  %v606_v31 = vand.u32 2147483648, %v594_v25  ;;  %vm600_vm11 = vweird.f32 %v594_v25  ;;  %v604_v32 = vand.u32 2147483647, %v594_v25 }
 0xe96   :  { %v607_v34 = vor.u32 1.1754944e-38, %v606_v31  ;;  %vm605_vm13 = vcmp.eq.f32.partialorder %v604_v32, 8.507059e+37 }
 0xe9a   :  { %v900_v26 = vpop.eup %899 }
 0xe9b   :  { %v596_v27 = vmul.f32 %v900_v26, %v594_v25  ;;  %vm601_vm10 = vweird.f32 %v900_v26 }
 0xe9c   :  { %vm602_vm12 = vmor %vm600_vm11, %vm601_vm10 }
 0xe9d   :  { %v597_v28 = vsub.f32 1.0, %v596_v27 }
 0xe9f   :  { %v598_v29 = vmul.f32 %v900_v26, %v597_v28 }
 0xea1   :  { %v599_v30 = vadd.f32 %v900_v26, %v598_v29 }
 0xea3   :  { %v603_v33 = vsel %vm602_vm12, %v900_v26, %v599_v30 }
 0xea4   :  { %v608_v36 = vsel %vm605_vm13, %v607_v34, %v603_v33 }
 0xea5   :  { %v615_v39 = vmul.f32 %v613_v38, %v608_v36 }
 0xf02   :  { %v618_v35 = vpop.permute.xlu0 %617 }
 0xf03   :  { %v620_v37 = vmul.f32 %v618_v35, %v608_v36 }
 0xf05   :  { %622 = vrot.lane.b32.xlu2 %v620_v37, %s913_s16 }
 0xf5f   :  { %v623_v40 = vpop.permute.xlu2 %622 }
 0xf60   :  { %v625_v41 = vadd.f32 %v623_v40, %v615_v39 }
 0xf62   :  { %901 = vtanh.f32 %v625_v41  ;;  %633 = vrot.lane.b32.xlu2 %v625_v41, %s914_s17 }
 0xf68   :  { %v902_v42 = vpop.eup %901 }
 0xf69   :  { %628 = vrot.lane.b32.xlu0 %v902_v42, %s912_s15 }
 0xfbc   :  { %v634_v43 = vpop.permute.xlu2 %633 }
 0xfbd   :  { %636 = vst.msk [vmem:[#allocation3] sm:$0xff] %vm16_vm0, %v634_v43 }
 0xfc4   :  { %v643_v47 = vld [vmem:[#allocation3] sm:$0xff] }
 0xfdb   :  { %v629_v45 = vpop.permute.xlu0 %628 }
 0xfdc   :  { %v631_v46 = vmul.f32 %v629_v45, %v608_v36 }
 0xfde   :  { %638 = vrot.lane.b32.xlu1 %v631_v46, %s913_s16 }
 0xfe6   :  { %701 = vrot.lane.b32.xlu1 %v643_v47, %s913_s16 }
0x1050   :  { %v639_v49 = vpop.permute.xlu1 %638 }
0x1051   :  { %641 = vst.msk [vmem:[#allocation2] sm:$0xff] %vm16_vm0, %v639_v49 }
0x1058   :  { %v642_v50 = vld [vmem:[#allocation2] sm:$0xff]  ;;  %v702_v8 = vpop.permute.xlu1 %701 }
0x1059   :  { %v646_v51 = vpack.c.bf16 %v642_v50, %v642_v50 }
0x105b   :  { %825 = vmatmul.msk.bf16.vlgmr.msrb.gmra.mxu3 %vm16_vm0, %v646_v51 }
0x10de   :  { %v675_v53 = vpop.f32.mrf.mxu3 }
0x10df   :  { %v679_v54 = vadd.f32 %v816_v52, %v675_v53 }
0x10e1   :  { %903 = vtanh.f32 %v679_v54  ;;  %v826_v57 = vmul.f32 -1.442695, %v679_v54 }
0x10e3   :  { %905 = vpow2.f32 %v826_v57 }
0x10e6   :  { %v677_v55 = vpop.f32.mrf.mxu3 }
0x10e7   :  { %v904_v56 = vpop.eup %903 }
0x10e8   :  { %706 = vrot.lane.b32.xlu0 %v904_v56, %s912_s15 }
0x10e9   :  { %v906_v58 = vpop.eup %905 }
0x10ea   :  { %v683_v59 = vadd.f32 1.0, %v906_v58 }
0x10ec   :  { %907 = vrcp.f32 %v683_v59  ;;  %v695_v1 = vand.u32 2147483648, %v683_v59  ;;  %vm689_vm15 = vweird.f32 %v683_v59  ;;  %v693_v2 = vand.u32 2147483647, %v683_v59 }
0x10ee   :  { %v696_v4 = vor.u32 1.1754944e-38, %v695_v1  ;;  %vm694_vm2 = vcmp.eq.f32.partialorder %v693_v2, 8.507059e+37 }
0x10f2   :  { %v908_v60 = vpop.eup %907 }
0x10f3   :  { %v685_v61 = vmul.f32 %v908_v60, %v683_v59  ;;  %vm690_vm14 = vweird.f32 %v908_v60 }
0x10f4   :  { %vm691_vm1 = vmor %vm689_vm15, %vm690_vm14 }
0x10f5   :  { %v686_v62 = vsub.f32 1.0, %v685_v61 }
0x10f7   :  { %v687_v63 = vmul.f32 %v908_v60, %v686_v62 }
0x10f9   :  { %v688_v0 = vadd.f32 %v908_v60, %v687_v63 }
0x10fb   :  { %v692_v3 = vsel %vm691_vm1, %v908_v60, %v688_v0 }
0x10fc   :  { %v697_v6 = vsel %vm694_vm2, %v696_v4, %v692_v3 }
0x10fd   :  { %v704_v9 = vmul.f32 %v702_v8, %v697_v6 }
0x115a   :  { %v707_v5 = vpop.permute.xlu0 %706 }
0x115b   :  { %v709_v7 = vmul.f32 %v707_v5, %v697_v6 }
0x115d   :  { %711 = vrot.lane.b32.xlu2 %v709_v7, %s913_s16 }
0x11b7   :  { %v712_v10 = vpop.permute.xlu2 %711 }
0x11b8   :  { %v714_v11 = vadd.f32 %v712_v10, %v704_v9 }
0x11ba   :  { %909 = vtanh.f32 %v714_v11  ;;  %722 = vrot.lane.b32.xlu2 %v714_v11, %s914_s17 }
0x11c0   :  { %v910_v12 = vpop.eup %909 }
0x11c1   :  { %717 = vrot.lane.b32.xlu0 %v910_v12, %s912_s15 }
0x1214   :  { %v723_v13 = vpop.permute.xlu2 %722 }
0x1215   :  { %725 = vst.msk [vmem:[#allocation3] sm:$0xff] %vm16_vm0, %v723_v13 }
0x1233   :  { %v718_v14 = vpop.permute.xlu0 %717 }
0x1234   :  { %v720_v15 = vmul.f32 %v718_v14, %v697_v6 }
0x1236   :  { %727 = vrot.lane.b32.xlu1 %v720_v15, %s913_s16 }
0x12a8   :  { %v728_v16 = vpop.permute.xlu1 %727 }
0x12a9   :  { %730 = vst.msk [vmem:[#allocation2] sm:$0xff] %vm16_vm0, %v728_v16 }
0x12b0   :  { %v734_v17 = vld [vmem:[#allocation2] sm:$0xff] }
0x12b1   :  { %735 = vst.msk [vmem:[%s1082_s2] sm:$0xff] %vm16_vm0, %v734_v17 }

</bundles_post_ra>
